<compile_context>
chip_gen: v5e
topology: v5e:2x2
jax: 0.10.0
libtpu: 0.0.40
codegen_flags: <defaults>
</compile_context>

<pallas_src>
import jax
import jax.numpy as jnp
from jax.experimental import pallas as pl
from jax.experimental.pallas import tpu as pltpu


def _add_pos_kernel(x_ref, pos_ref, o_ref):
    # x_ref / o_ref: (tb, ts, N*D)  or (tb, ts, N, D)
    # pos_ref:       (ts, N*D)      or (ts, 1, D)
    # Pure VPU broadcast add; pos broadcasts over the leading batch-chunk dim
    # (and over N in the lane-dense-D path).
    o_ref[...] = x_ref[...] + pos_ref[...][None]


def _vmem_limit_bytes():
    try:
        cap = pltpu.get_tpu_info().vmem_capacity_bytes
    except Exception:
        cap = 64 * 1024 * 1024  # conservative fallback: v7x per-TC physical VMEM
    # ~75% of physical, floor 32 MiB; leaves headroom for compiler scratch.
    return max(32 * 1024 * 1024, (cap * 3) // 4)


def _pick_tiles(B, S, row_bytes, total_bytes, vmem_limit):
    """Pick (tb, ts): batch rows and seq rows per block."""
    # Six block-sized buffers live per grid step (x, out, pos x double-buffer)
    # => budget a single block at ~1/8 of the VMEM limit.
    block_budget = max(row_bytes, vmem_limit // 8)
    rows_budget = max(1, block_budget // row_bytes)  # tb * ts rows per block
    if rows_budget >= S:
        ts = S
        tb = max(1, min(B, rows_budget // S))
    else:
        tb = 1
        # Sublane-safe: multiple of 8 (or == S when S < 8); never collapse to 1.
        ts = min(S, max(8, (rows_budget // 8) * 8))
    # v7x has 2 TensorCores: if the whole tensor fits in a single block but is
    # big enough to matter, split the batch axis so both cores get work.
    if tb >= B and ts >= S and B > 1 and total_bytes > (1 << 20):
        tb = (B + 1) // 2
    return tb, ts


def _forward(x, pos_embedding):
    """x: (B, S, N, D), pos_embedding: (1, S, 1, D) -> (B, S, N, D)."""
    B, S, N, D = x.shape
    assert pos_embedding.shape == (1, S, 1, D)

    out_dtype = jnp.result_type(x.dtype, pos_embedding.dtype)  # PyTorch-style promotion
    itemsize = jnp.dtype(out_dtype).itemsize
    row_bytes = N * D * itemsize                 # one (batch, seq) row
    total_bytes = B * S * row_bytes

    vmem_limit = _vmem_limit_bytes()
    tb, ts = _pick_tiles(B, S, row_bytes, total_bytes, vmem_limit)
    # Seq chunks outermost: the pos block index is constant across the inner
    # batch loop, so pos stays VMEM-resident between steps.
    grid = (pl.cdiv(S, ts), pl.cdiv(B, tb))

    x = x.astype(out_dtype)
    pos = pos_embedding.astype(out_dtype)

    if D % 128 == 0:
        # D already lane-dense: DO NOT pre-broadcast pos over N (saves N-fold
        # pos HBM reads); broadcast over N happens inside the kernel.
        x_in = x                                             # (B, S, N, D)
        pos_in = pos.reshape(S, 1, D)                        # (S, 1, D)
        in_specs = [
            pl.BlockSpec((tb, ts, N, D), lambda si, bi: (bi, si, 0, 0)),
            pl.BlockSpec((ts, 1, D), lambda si, bi: (si, 0, 0)),
        ]
        out_spec = pl.BlockSpec((tb, ts, N, D), lambda si, bi: (bi, si, 0, 0))
        out_shape = jax.ShapeDtypeStruct((B, S, N, D), out_dtype)
    else:
        # Small D (demo: 32): flatten to N*D so the last block dim is
        # lane-dense (N*D = 128 here) => unmasked full-vreg stores.
        ND = N * D
        x_in = x.reshape(B, S, ND)                           # (B, S, ND)
        pos_in = jnp.broadcast_to(pos, (1, S, N, D)).reshape(S, ND)
        in_specs = [
            pl.BlockSpec((tb, ts, ND), lambda si, bi: (bi, si, 0)),
            pl.BlockSpec((ts, ND), lambda si, bi: (si, 0)),
        ]
        out_spec = pl.BlockSpec((tb, ts, ND), lambda si, bi: (bi, si, 0))
        out_shape = jax.ShapeDtypeStruct((B, S, ND), out_dtype)

    out = pl.pallas_call(
        _add_pos_kernel,
        out_shape=out_shape,
        grid_spec=pltpu.PrefetchScalarGridSpec(
            num_scalar_prefetch=0,
            grid=grid,
            in_specs=in_specs,
            out_specs=out_spec,
        ),
        compiler_params=pltpu.CompilerParams(
            dimension_semantics=("parallel", "parallel"),
            vmem_limit_bytes=vmem_limit,
        ),
        # x is dead after the add: alias it onto the output so no second
        # B*S*N*D HBM buffer is allocated (effective because x is donated).
        input_output_aliases={0: 0},
    )(x_in, pos_in)

    return out.reshape(B, S, N, D)


# Donate x so the in/out aliasing above actually reuses x's HBM buffer.
# NOTE: callers must not reuse `x` after this call.
learnable_positional_encoding = jax.jit(_forward, donate_argnums=(0,))


if __name__ == "__main__":
    # Small shapes consistent with the module: batch=2, seq_len=8,
    # n_tokens=4, embed_dim=32 (N*D = 128 => fully lane-dense blocks).
    B, S, N, D = 2, 8, 4, 32

    key = jax.random.PRNGKey(0)
    kx, kp = jax.random.split(key)

    x = jax.random.normal(kx, (B, S, N, D), dtype=jnp.float32)
    # Deterministic "randn" init of the learnable positional embedding.
    pos_embedding = jax.random.normal(kp, (1, S, 1, D), dtype=jnp.float32)

    # Reference is computed (and materialized) BEFORE the kernel call, since
    # x is donated to the kernel.
    ref = jax.block_until_ready(x + pos_embedding)

    out = learnable_positional_encoding(x, pos_embedding)
    out = jax.block_until_ready(out)

    assert out.shape == (B, S, N, D)
    assert out.dtype == ref.dtype
    assert jnp.allclose(out, ref, atol=1e-6), "mismatch vs reference"

    print("KERNEL_OK")
</pallas_src>

<mosaic_0001>
module attributes {stable_mosaic.version = 11 : i64} {
  func.func @_add_pos_kernel(%arg0: i32, %arg1: i32, %arg2: memref<2x8x128xf32, #tpu.memory_space<vmem>>, %arg3: memref<8x128xf32, #tpu.memory_space<vmem>>, %arg4: memref<2x8x128xf32, #tpu.memory_space<vmem>>) attributes {dimension_semantics = [#tpu.dimension_semantics<parallel>, #tpu.dimension_semantics<parallel>], iteration_bounds = array<i64: 1, 1>, scalar_prefetch = 0 : i64, scratch_operands = 0 : i64, tpu.core_type = #tpu.core_type<tc>, window_params = [{transform_indices = @transform_0, window_bounds = array<i64: 2, 8, 128>}, {transform_indices = @transform_1, window_bounds = array<i64: 8, 128>}, {transform_indices = @transform_2, window_bounds = array<i64: 2, 8, 128>}]} {
    %c0 = arith.constant 0 : index
    %c0_0 = arith.constant 0 : index
    %c0_1 = arith.constant 0 : index
    %0 = vector.load %arg2[%c0, %c0_0, %c0_1] : memref<2x8x128xf32, #tpu.memory_space<vmem>>, vector<2x8x128xf32>
    %c0_2 = arith.constant 0 : index
    %c0_3 = arith.constant 0 : index
    %1 = vector.load %arg3[%c0_2, %c0_3] : memref<8x128xf32, #tpu.memory_space<vmem>>, vector<8x128xf32>
    %2 = vector.shape_cast %1 : vector<8x128xf32> to vector<1x8x128xf32>
    %3 = vector.broadcast %2 : vector<1x8x128xf32> to vector<2x8x128xf32>
    %4 = arith.addf %0, %3 : vector<2x8x128xf32>
    %c0_4 = arith.constant 0 : index
    %c0_5 = arith.constant 0 : index
    %c0_6 = arith.constant 0 : index
    %5 = vector.load %arg4[%c0_4, %c0_5, %c0_6] : memref<2x8x128xf32, #tpu.memory_space<vmem>>, vector<2x8x128xf32>
    tpu.vector_store %arg4[%c0_4, %c0_5, %c0_6], %4 {strides = array<i32>} : memref<2x8x128xf32, #tpu.memory_space<vmem>>, vector<2x8x128xf32>,
    return
  }
  func.func @transform_0(%arg0: i32, %arg1: i32) -> (i32, i32, i32) {
    %c0_i32 = arith.constant 0 : i32
    %c0_i32_0 = arith.constant 0 : i32
    return %arg1, %arg0, %c0_i32 : i32, i32, i32
  }
  func.func @transform_1(%arg0: i32, %arg1: i32) -> (i32, i32) {
    %c0_i32 = arith.constant 0 : i32
    %c0_i32_0 = arith.constant 0 : i32
    return %arg0, %c0_i32 : i32, i32
  }
  func.func @transform_2(%arg0: i32, %arg1: i32) -> (i32, i32, i32) {
    %c0_i32 = arith.constant 0 : i32
    %c0_i32_0 = arith.constant 0 : i32
    return %arg1, %arg0, %c0_i32 : i32, i32, i32
  }
}

</mosaic_0001>

<bundles_post_ra>
// kernel: _forward.1
= control target key start
LH: loop header
LB: loop body
LE: loop exit
PB: predicated region body
PF: predicated region fallthrough
CT: control target
= control target key end

     0   :  { %s52_s0 = inlined_call_operand.vmem [shape: f32[2,8,128], index: 0, kind: input, shape index: {}, may-alias: {0,2}]   ;;  %s53_s1 = inlined_call_operand.vmem [shape: f32[8,128], index: 1, kind: input, shape index: {}]   ;;  %s54_s2 = inlined_call_operand.vmem [shape: f32[2,8,128], index: 2, kind: output, shape index: {}, may-alias: {0,2}]  }
   0x1   :  { %v11_v0 = vld [vmem:[%s52_s0] sm:$0xff]  ;;  %v12_v2 = vld [vmem:[%s52_s0 + $0x8] sm:$0xff] }
   0x2   :  { %v13_v1 = vld [vmem:[%s53_s1] sm:$0xff] }
   0x3   :  { %v14_v3 = vadd.f32 %v13_v1, %v11_v0  ;;  %v15_v4 = vadd.f32 %v13_v1, %v12_v2 }
   0x5   :  { %16 = vst [vmem:[%s54_s2] sm:$0xff] %v14_v3 }
   0x6   :  { %17 = vst [vmem:[%s54_s2 + $0x8] sm:$0xff] %v15_v4 }

</bundles_post_ra>
